<compile_context>
chip_gen: v6e
topology: v6e:2x2x1
jax: 0.10.0
libtpu: 0.0.40
codegen_flags: <defaults>
</compile_context>

<pallas_src>
import math

import jax
import jax.numpy as jnp
from jax.experimental import pallas as pl
from jax.experimental.pallas import tpu as pltpu

N_OBS = 4        # CartPole-v1 observation dim
N_ACTIONS = 2    # CartPole-v1 action dim
HIDDEN = 128

PAD_OUT = 128    # lane-dense output width (last dim multiple of 128)
M_TILE = 128     # batch rows per grid step for large (replay) batches
M_MIN = 8        # sublane granularity: smallest legal batch tile


def dqn_kernel(x_ref, w1_ref, b1_ref, w2_ref, b2_ref, w3_ref, b3_ref, o_ref):
    """One batch-tile of the MLP: VPU layer-1 + two bf16 MXU layers, f32 epilogues."""
    # ---- Layer 1 on the VPU: K = n_obs = 4, no K padding, no MXU pass. ----
    x = x_ref[...]                                  # (m_tile, N_OBS) f32
    h1 = b1_ref[...]                                # (1, HIDDEN) f32
    for k in range(N_OBS):                          # unrolled at trace time
        h1 = h1 + x[:, k:k + 1] * w1_ref[k:k + 1, :]
    h1 = jnp.maximum(h1, 0.0).astype(jnp.bfloat16)  # (m_tile, HIDDEN)

    # ---- Layer 2: bf16 MXU matmul, f32 accumulate, f32 bias + ReLU. ----
    h2 = jnp.dot(h1, w2_ref[...], preferred_element_type=jnp.float32) + b2_ref[...]
    h2 = jnp.maximum(h2, 0.0).astype(jnp.bfloat16)

    # ---- Layer 3: bf16 MXU matmul, f32 accumulate + bias; lane-dense store. ----
    o_ref[...] = jnp.dot(h2, w3_ref[...], preferred_element_type=jnp.float32) + b3_ref[...]


def init_dqn_params(key, n_obs=N_OBS, n_actions=N_ACTIONS, hidden=HIDDEN):
    """PyTorch nn.Linear-style init; weights stored as (in_features, out_features)."""
    keys = jax.random.split(key, 6)

    def linear(kw, kb, fan_in, fan_out):
        bound = 1.0 / math.sqrt(fan_in)
        w = jax.random.uniform(kw, (fan_in, fan_out), jnp.float32, -bound, bound)
        b = jax.random.uniform(kb, (fan_out,), jnp.float32, -bound, bound)
        return w, b

    w1, b1 = linear(keys[0], keys[1], n_obs, hidden)
    w2, b2 = linear(keys[2], keys[3], hidden, hidden)
    w3, b3 = linear(keys[4], keys[5], hidden, n_actions)
    return (w1, b1, w2, b2, w3, b3)


def _pad_to(a, shape):
    return jnp.pad(a, [(0, t - s) for s, t in zip(a.shape, shape)])


def prepare_params(params):
    """One-time conversion to the kernel's cached layout (call once, reuse every step).

    - w1/b1 stay f32 (layer 1 runs on the VPU; v5e VPU has no bf16).
    - w2/w3 cast to bf16 for the MXU; w3/b3 padded to a lane-dense 128-wide output.
    """
    w1, b1, w2, b2, w3, b3 = params
    return (
        w1.astype(jnp.float32),                                        # (N_OBS, HIDDEN)   f32
        b1.reshape(1, HIDDEN).astype(jnp.float32),                     # (1, HIDDEN)       f32
        w2.astype(jnp.bfloat16),                                       # (HIDDEN, HIDDEN)  bf16
        b2.reshape(1, HIDDEN).astype(jnp.float32),                     # (1, HIDDEN)       f32
        _pad_to(w3, (HIDDEN, PAD_OUT)).astype(jnp.bfloat16),           # (HIDDEN, PAD_OUT) bf16
        _pad_to(b3.reshape(1, -1), (1, PAD_OUT)).astype(jnp.float32),  # (1, PAD_OUT)      f32
    )


@jax.jit
def dqn_forward(x, prep):
    """x: (batch, n_obs) -> (batch, n_actions), using the cached padded params."""
    w1, b1, w2, b2, w3, b3 = prep
    batch = x.shape[0]

    # Adaptive batch tiling (shapes are static under jit):
    #   small batches -> a single 8-row-aligned tile (action selection path)
    #   large batches -> 128-row tiles on a parallel grid (replay path)
    if batch <= M_TILE:
        m_tile = max(M_MIN, ((batch + M_MIN - 1) // M_MIN) * M_MIN)
        m_pad = m_tile
    else:
        m_tile = M_TILE
        m_pad = ((batch + M_TILE - 1) // M_TILE) * M_TILE

    x_p = x.astype(jnp.float32)
    if m_pad != batch:
        # Only the batch axis is padded (tiny); the extra rows are discarded below.
        x_p = jnp.pad(x_p, ((0, m_pad - batch), (0, 0)))

    grid = (m_pad // m_tile,)

    flops = 2 * m_pad * (N_OBS * HIDDEN + HIDDEN * HIDDEN + HIDDEN * PAD_OUT)
    bytes_accessed = (
        x_p.size * 4                      # x (f32)
        + w1.size * 4 + b1.size * 4       # layer-1 params (f32)
        + w2.size * 2 + b2.size * 4       # layer-2 params (bf16 / f32)
        + w3.size * 2 + b3.size * 4       # layer-3 params (bf16 / f32)
        + m_pad * PAD_OUT * 4             # output (f32)
    )

    out_padded = pl.pallas_call(
        dqn_kernel,
        out_shape=jax.ShapeDtypeStruct((m_pad, PAD_OUT), jnp.float32),
        grid_spec=pltpu.PrefetchScalarGridSpec(
            num_scalar_prefetch=0,
            grid=grid,
            in_specs=[
                pl.BlockSpec((m_tile, N_OBS), lambda i: (i, 0)),   # x tile
                pl.BlockSpec((N_OBS, HIDDEN), lambda i: (0, 0)),   # w1 (resident)
                pl.BlockSpec((1, HIDDEN), lambda i: (0, 0)),       # b1
                pl.BlockSpec((HIDDEN, HIDDEN), lambda i: (0, 0)),  # w2
                pl.BlockSpec((1, HIDDEN), lambda i: (0, 0)),       # b2
                pl.BlockSpec((HIDDEN, PAD_OUT), lambda i: (0, 0)), # w3
                pl.BlockSpec((1, PAD_OUT), lambda i: (0, 0)),      # b3
            ],
            out_specs=pl.BlockSpec((m_tile, PAD_OUT), lambda i: (i, 0)),
        ),
        compiler_params=pltpu.CompilerParams(
            dimension_semantics=("parallel",),
        ),
        cost_estimate=pl.CostEstimate(
            flops=flops, transcendentals=0, bytes_accessed=bytes_accessed),
    )(x_p, w1, b1, w2, b2, w3, b3)

    return out_padded[:batch, :N_ACTIONS]


def dqn_forward_ref(x, params):
    """Plain-JAX f32 reference matching the PyTorch forward."""
    w1, b1, w2, b2, w3, b3 = params
    h1 = jnp.maximum(x @ w1 + b1, 0.0)
    h2 = jnp.maximum(h1 @ w2 + b2, 0.0)
    return h2 @ w3 + b3


if __name__ == "__main__":
    key = jax.random.PRNGKey(0)
    k_params, k_x, k_x2 = jax.random.split(key, 3)

    params = init_dqn_params(k_params)
    prep = prepare_params(params)          # one-time padded/bf16 cache, reused every call
    prep = jax.block_until_ready(prep)

    # Small action-selection-style batch (single 8-row tile path).
    batch = 2
    x = jax.random.normal(k_x, (batch, N_OBS), dtype=jnp.float32)
    out = jax.block_until_ready(dqn_forward(x, prep))
    ref = dqn_forward_ref(x, params)
    assert out.shape == (batch, N_ACTIONS), out.shape
    assert jnp.allclose(out, ref, atol=3e-2, rtol=3e-2), (out, ref)

    # Replay-batch-sized call (exercises the multi-tile "parallel" grid path).
    x2 = jax.random.normal(k_x2, (256, N_OBS), dtype=jnp.float32)
    out2 = jax.block_until_ready(dqn_forward(x2, prep))
    ref2 = dqn_forward_ref(x2, params)
    assert out2.shape == (256, N_ACTIONS), out2.shape
    assert jnp.allclose(out2, ref2, atol=3e-2, rtol=3e-2)

    print("KERNEL_OK")
</pallas_src>

<mosaic_0001>
module attributes {stable_mosaic.version = 11 : i64} {
  func.func @dqn_kernel(%arg0: i32, %arg1: memref<8x4xf32, #tpu.memory_space<vmem>>, %arg2: memref<4x128xf32, #tpu.memory_space<vmem>>, %arg3: memref<1x128xf32, #tpu.memory_space<vmem>>, %arg4: memref<128x128xbf16, #tpu.memory_space<vmem>>, %arg5: memref<1x128xf32, #tpu.memory_space<vmem>>, %arg6: memref<128x128xbf16, #tpu.memory_space<vmem>>, %arg7: memref<1x128xf32, #tpu.memory_space<vmem>>, %arg8: memref<8x128xf32, #tpu.memory_space<vmem>>) attributes {dimension_semantics = [#tpu.dimension_semantics<parallel>], iteration_bounds = array<i64: 1>, scalar_prefetch = 0 : i64, scratch_operands = 0 : i64, tpu.core_type = #tpu.core_type<tc>, window_params = [{transform_indices = @transform_0, window_bounds = array<i64: 8, 4>}, {pipeline_mode = #tpu.pipeline_mode<synchronous>, transform_indices = @transform_1, window_bounds = array<i64: 4, 128>}, {pipeline_mode = #tpu.pipeline_mode<synchronous>, transform_indices = @transform_2, window_bounds = array<i64: 1, 128>}, {pipeline_mode = #tpu.pipeline_mode<synchronous>, transform_indices = @transform_3, window_bounds = array<i64: 128, 128>}, {pipeline_mode = #tpu.pipeline_mode<synchronous>, transform_indices = @transform_4, window_bounds = array<i64: 1, 128>}, {pipeline_mode = #tpu.pipeline_mode<synchronous>, transform_indices = @transform_5, window_bounds = array<i64: 128, 128>}, {pipeline_mode = #tpu.pipeline_mode<synchronous>, transform_indices = @transform_6, window_bounds = array<i64: 1, 128>}, {transform_indices = @transform_7, window_bounds = array<i64: 8, 128>}]} {
    %c0 = arith.constant 0 : index
    %c0_0 = arith.constant 0 : index
    %0 = vector.load %arg1[%c0, %c0_0] : memref<8x4xf32, #tpu.memory_space<vmem>>, vector<8x4xf32>
    %c0_1 = arith.constant 0 : index
    %c0_2 = arith.constant 0 : index
    %1 = vector.load %arg3[%c0_1, %c0_2] : memref<1x128xf32, #tpu.memory_space<vmem>>, vector<1x128xf32>
    %2 = vector.extract_strided_slice %0 {offsets = [0, 0], sizes = [8, 1], strides = [1, 1]} : vector<8x4xf32> to vector<8x1xf32>
    %c0_3 = arith.constant 0 : index
    %c0_4 = arith.constant 0 : index
    %3 = vector.load %arg2[%c0_3, %c0_4] : memref<4x128xf32, #tpu.memory_space<vmem>>, vector<1x128xf32>
    %4 = vector.broadcast %2 : vector<8x1xf32> to vector<8x128xf32>
    %5 = vector.broadcast %3 : vector<1x128xf32> to vector<8x128xf32>
    %6 = arith.mulf %4, %5 : vector<8x128xf32>
    %7 = vector.broadcast %1 : vector<1x128xf32> to vector<8x128xf32>
    %8 = arith.addf %7, %6 : vector<8x128xf32>
    %9 = vector.extract_strided_slice %0 {offsets = [0, 1], sizes = [8, 1], strides = [1, 1]} : vector<8x4xf32> to vector<8x1xf32>
    %c1 = arith.constant 1 : index
    %c0_5 = arith.constant 0 : index
    %10 = vector.load %arg2[%c1, %c0_5] : memref<4x128xf32, #tpu.memory_space<vmem>>, vector<1x128xf32>
    %11 = vector.broadcast %9 : vector<8x1xf32> to vector<8x128xf32>
    %12 = vector.broadcast %10 : vector<1x128xf32> to vector<8x128xf32>
    %13 = arith.mulf %11, %12 : vector<8x128xf32>
    %14 = arith.addf %8, %13 : vector<8x128xf32>
    %15 = vector.extract_strided_slice %0 {offsets = [0, 2], sizes = [8, 1], strides = [1, 1]} : vector<8x4xf32> to vector<8x1xf32>
    %c2 = arith.constant 2 : index
    %c0_6 = arith.constant 0 : index
    %16 = vector.load %arg2[%c2, %c0_6] : memref<4x128xf32, #tpu.memory_space<vmem>>, vector<1x128xf32>
    %17 = vector.broadcast %15 : vector<8x1xf32> to vector<8x128xf32>
    %18 = vector.broadcast %16 : vector<1x128xf32> to vector<8x128xf32>
    %19 = arith.mulf %17, %18 : vector<8x128xf32>
    %20 = arith.addf %14, %19 : vector<8x128xf32>
    %21 = vector.extract_strided_slice %0 {offsets = [0, 3], sizes = [8, 1], strides = [1, 1]} : vector<8x4xf32> to vector<8x1xf32>
    %c3 = arith.constant 3 : index
    %c0_7 = arith.constant 0 : index
    %22 = vector.load %arg2[%c3, %c0_7] : memref<4x128xf32, #tpu.memory_space<vmem>>, vector<1x128xf32>
    %23 = vector.broadcast %21 : vector<8x1xf32> to vector<8x128xf32>
    %24 = vector.broadcast %22 : vector<1x128xf32> to vector<8x128xf32>
    %25 = arith.mulf %23, %24 : vector<8x128xf32>
    %26 = arith.addf %20, %25 : vector<8x128xf32>
    %cst = arith.constant 0.000000e+00 : f32
    %27 = vector.broadcast %cst : f32 to vector<8x128xf32>
    %28 = arith.maximumf %26, %27 : vector<8x128xf32>
    %29 = arith.truncf %28 : vector<8x128xf32> to vector<8x128xbf16>
    %c0_8 = arith.constant 0 : index
    %c0_9 = arith.constant 0 : index
    %30 = vector.load %arg4[%c0_8, %c0_9] : memref<128x128xbf16, #tpu.memory_space<vmem>>, vector<128x128xbf16>
    %cst_10 = arith.constant dense<0.000000e+00> : vector<8x128xf32>
    %31 = tpu.matmul %29, %30, %cst_10 {dimension_numbers = #tpu.dot_dimension_numbers<[1], [0], [0], [1], [0, 0, 1, 1], [], []>} : vector<8x128xbf16>, vector<128x128xbf16>, vector<8x128xf32> -> vector<8x128xf32>
    %c0_11 = arith.constant 0 : index
    %c0_12 = arith.constant 0 : index
    %32 = vector.load %arg5[%c0_11, %c0_12] : memref<1x128xf32, #tpu.memory_space<vmem>>, vector<1x128xf32>
    %33 = vector.broadcast %32 : vector<1x128xf32> to vector<8x128xf32>
    %34 = arith.addf %31, %33 : vector<8x128xf32>
    %cst_13 = arith.constant 0.000000e+00 : f32
    %35 = vector.broadcast %cst_13 : f32 to vector<8x128xf32>
    %36 = arith.maximumf %34, %35 : vector<8x128xf32>
    %37 = arith.truncf %36 : vector<8x128xf32> to vector<8x128xbf16>
    %c0_14 = arith.constant 0 : index
    %c0_15 = arith.constant 0 : index
    %38 = vector.load %arg6[%c0_14, %c0_15] : memref<128x128xbf16, #tpu.memory_space<vmem>>, vector<128x128xbf16>
    %cst_16 = arith.constant dense<0.000000e+00> : vector<8x128xf32>
    %39 = tpu.matmul %37, %38, %cst_16 {dimension_numbers = #tpu.dot_dimension_numbers<[1], [0], [0], [1], [0, 0, 1, 1], [], []>} : vector<8x128xbf16>, vector<128x128xbf16>, vector<8x128xf32> -> vector<8x128xf32>
    %c0_17 = arith.constant 0 : index
    %c0_18 = arith.constant 0 : index
    %40 = vector.load %arg7[%c0_17, %c0_18] : memref<1x128xf32, #tpu.memory_space<vmem>>, vector<1x128xf32>
    %41 = vector.broadcast %40 : vector<1x128xf32> to vector<8x128xf32>
    %42 = arith.addf %39, %41 : vector<8x128xf32>
    %c0_19 = arith.constant 0 : index
    %c0_20 = arith.constant 0 : index
    %43 = vector.load %arg8[%c0_19, %c0_20] : memref<8x128xf32, #tpu.memory_space<vmem>>, vector<8x128xf32>
    tpu.vector_store %arg8[%c0_19, %c0_20], %42 {strides = array<i32>} : memref<8x128xf32, #tpu.memory_space<vmem>>, vector<8x128xf32>,
    return
  }
  func.func @transform_0(%arg0: i32) -> (i32, i32) {
    %c0_i32 = arith.constant 0 : i32
    %c0_i32_0 = arith.constant 0 : i32
    return %arg0, %c0_i32 : i32, i32
  }
  func.func @transform_1(%arg0: i32) -> (i32, i32) {
    %c0_i32 = arith.constant 0 : i32
    %c0_i32_0 = arith.constant 0 : i32
    %c0_i32_1 = arith.constant 0 : i32
    return %c0_i32, %c0_i32_0 : i32, i32
  }
  func.func @transform_2(%arg0: i32) -> (i32, i32) {
    %c0_i32 = arith.constant 0 : i32
    %c0_i32_0 = arith.constant 0 : i32
    %c0_i32_1 = arith.constant 0 : i32
    return %c0_i32, %c0_i32_0 : i32, i32
  }
  func.func @transform_3(%arg0: i32) -> (i32, i32) {
    %c0_i32 = arith.constant 0 : i32
    %c0_i32_0 = arith.constant 0 : i32
    %c0_i32_1 = arith.constant 0 : i32
    return %c0_i32, %c0_i32_0 : i32, i32
  }
  func.func @transform_4(%arg0: i32) -> (i32, i32) {
    %c0_i32 = arith.constant 0 : i32
    %c0_i32_0 = arith.constant 0 : i32
    %c0_i32_1 = arith.constant 0 : i32
    return %c0_i32, %c0_i32_0 : i32, i32
  }
  func.func @transform_5(%arg0: i32) -> (i32, i32) {
    %c0_i32 = arith.constant 0 : i32
    %c0_i32_0 = arith.constant 0 : i32
    %c0_i32_1 = arith.constant 0 : i32
    return %c0_i32, %c0_i32_0 : i32, i32
  }
  func.func @transform_6(%arg0: i32) -> (i32, i32) {
    %c0_i32 = arith.constant 0 : i32
    %c0_i32_0 = arith.constant 0 : i32
    %c0_i32_1 = arith.constant 0 : i32
    return %c0_i32, %c0_i32_0 : i32, i32
  }
  func.func @transform_7(%arg0: i32) -> (i32, i32) {
    %c0_i32 = arith.constant 0 : i32
    %c0_i32_0 = arith.constant 0 : i32
    return %arg0, %c0_i32 : i32, i32
  }
}

</mosaic_0001>

<bundles_post_ra>
// kernel: dqn_forward.1
= control target key start
LH: loop header
LB: loop body
LE: loop exit
PB: predicated region body
PF: predicated region fallthrough
CT: control target
= control target key end

     0   :  { %12 = vsyncpa [#allocation3], 0  ;;  %s598_s0 = inlined_call_operand.vmem [shape: f32[8,4], index: 0, kind: input, shape index: {}]   ;;  %s599_s1 = inlined_call_operand.vmem [shape: f32[4,128], index: 1, kind: input, shape index: {}]   ;;  %s600_s2 = inlined_call_operand.vmem [shape: f32[1,128], index: 2, kind: input, shape index: {}]   ;;  %s601_s3 = inlined_call_operand.hbm [shape: bf16[128,128], index: 3, kind: input, shape index: {}]   ;;  %s602_s4 = inlined_call_operand.vmem [shape: f32[1,128], index: 4, kind: input, shape index: {}]   ;;  %s603_s5 = inlined_call_operand.hbm [shape: bf16[128,128], index: 5, kind: input, shape index: {}]   ;;  %s604_s6 = inlined_call_operand.vmem [shape: f32[1,128], index: 6, kind: input, shape index: {}]   ;;  %s605_s7 = inlined_call_operand.vmem [shape: f32[8,128], index: 7, kind: output, shape index: {}]  }
   0x1   :  { %13 = vsyncpa [#allocation5], 0  ;;  %s497_s24 = smov [#allocation2]  }
   0x2   :  { %s25_s25 = sshll.u32 %s497_s24, 4  ;;  %s26_s25 = int_to_ptr.vmem [resolvable:$true] %s25_s25 }
   0x3   :  { %s461_s26 = scalar_lea.vmem %s26_s25, 1024  ;;  %p466_p1 = scmp.lt.s32.totalorder %s26_s25, %s26_s25 }
   0x4   :  { %p462_p0 = scmp.ne.s32.totalorder %s26_s25, %s461_s26  ;;  %p467_p2 = scmp.lt.s32.totalorder %s461_s26, %s461_s26 }
   0x6   :  { %p468_p3 = por %p467_p2, %p466_p1 }
   0x8   :  { %p469_p4 = pnand %p468_p3, %p462_p0 }
   0xa   :  { %472 = shalt.err (!%p469_p4)
}
   0xb   :  { %s498_s27 = smov 64   ;;  %s499_s28 = smov 4  }
   0xc   :  { %31 = dma.hbm_to_vmem [thread:$0]  %s601_s3, 1024, %s26_s25, [#allocation3], %s498_s27, %s498_s27, %s499_s28  }
   0xd   :  { %s500_s8 = smov [#allocation4]  }
   0xe   :  { %s39_s9 = sshll.u32 %s500_s8, 4  ;;  %s40_s9 = int_to_ptr.vmem [resolvable:$true] %s39_s9 }
   0xf   :  { %s481_s10 = scalar_lea.vmem %s40_s9, 1024  ;;  %p486_p6 = scmp.lt.s32.totalorder %s40_s9, %s40_s9 }
  0x10   :  { %p482_p5 = scmp.ne.s32.totalorder %s40_s9, %s481_s10  ;;  %p487_p7 = scmp.lt.s32.totalorder %s481_s10, %s481_s10 }
  0x12   :  { %p488_p8 = por %p487_p7, %p486_p6 }
  0x14   :  { %p489_p9 = pnand %p488_p8, %p482_p5 }
  0x16   :  { %492 = shalt.err (!%p489_p9)
}
  0x17   :  { %45 = dma.hbm_to_vmem [thread:$0]  %s603_s5, 1024, %s40_s9, [#allocation5], %s498_s27, %s498_s27, %s499_s28  }
  0x18   :  { %493 = dma.done.wait [#allocation3], 1024  }
  0x19   :  { %494 = vsyncadd [#allocation3], 4294966272 }
  0x1a   :  { %495 = dma.done.wait [#allocation5], 1024  }
  0x1b   :  { %496 = vsyncadd [#allocation5], 4294966272  ;;  %v501_v0 = vmov 0   ;;  %v502_v1 = vmov 2   ;;  %v503_v2 = vmov 0.0   ;;  %v55_v3 = vld [vmem:[%s598_s0] sm:$0xff] }
  0x1c   :  { %432 = vset.pattern.permute.xlu0 %v501_v0  ;;  %434 = vset.pattern.permute.xlu1 %v502_v1  ;;  %v437_v4 = vld [vmem:[#allocation2 + $0x38] sm:$0xff]   ;;  %v438_v5 = vld [vmem:[#allocation2 + $0x30] sm:$0xff]   ;;  %v504_v6 = vmov 1   ;;  %v505_v7 = vmov 3   ;;  %v439_v8 = vld [vmem:[#allocation2 + $0x28] sm:$0xff]   ;;  %vm506_vm0 = vmmov 0  }
  0x1d   :  { %382 = vmatprep.subr.bf16.mxu0 %v503_v2  ;;  %402 = vmatprep.subr.bf16.mxu1 %v503_v2  ;;  %v440_v9 = vld [vmem:[#allocation2 + $0x20] sm:$0xff]   ;;  %v445_v10 = vld [vmem:[#allocation4 + $0x38] sm:$0xff]   ;;  %v446_v12 = vld [vmem:[#allocation4 + $0x30] sm:$0xff]  }
  0x1e   :  { %60 = vperm.xlu0 %432, %v55_v3   ;;  %88 = vperm.xlu1 %434, %v55_v3   ;;  %v441_v11 = vld [vmem:[#allocation2 + $0x18] sm:$0xff]   ;;  %v442_v13 = vld [vmem:[#allocation2 + $0x10] sm:$0xff]   ;;  %v447_v14 = vld [vmem:[#allocation4 + $0x28] sm:$0xff]  }
  0x1f   :  { %383 = vmatpush3.bf16.msra.mxu0 %v437_v4  ;;  %398 = vmatprep.mubr.msk.bf16.mxu0 %vm506_vm0, %v503_v2  ;;  %v443_v15 = vld [vmem:[#allocation2 + $0x8] sm:$0xff]   ;;  %v448_v16 = vld [vmem:[#allocation4 + $0x20] sm:$0xff]   ;;  %v449_v18 = vld [vmem:[#allocation4 + $0x18] sm:$0xff]  }
  0x20   :  { %384 = vmatprep.subr.bf16.mxu0 %v503_v2  ;;  %418 = vmatprep.mubr.msk.bf16.mxu1 %vm506_vm0, %v503_v2  ;;  %v444_v17 = vld [vmem:[#allocation2] sm:$0xff]   ;;  %v450_v19 = vld [vmem:[#allocation4 + $0x10] sm:$0xff]   ;;  %v451_v39 = vld [vmem:[#allocation4 + $0x8] sm:$0xff]  }
  0x21   :  { %403 = vmatpush3.bf16.msra.mxu1 %v445_v10  ;;  %v341_v20 = vld [vmem:[%s599_s1] ss:$0 sm:$0xff]  ;;  %v343_v25 = vld [vmem:[%s599_s1 + $0x1] ss:$0 sm:$0xff]  ;;  %v344_v26 = vld [vmem:[%s599_s1 + $0x2] ss:$0 sm:$0xff] }
  0x22   :  { %433 = vset.pattern.permute.xlu0 %v504_v6  ;;  %435 = vset.pattern.permute.xlu1 %v505_v7  ;;  %v342_v24 = vld [vmem:[%s600_s2] ss:$0 sm:$0xff]  ;;  %v345_v28 = vld [vmem:[%s599_s1 + $0x3] ss:$0 sm:$0xff] }
  0x23   :  { %77 = vperm.xlu0 %433, %v55_v3   ;;  %99 = vperm.xlu1 %435, %v55_v3   ;;  %v452_v40 = vld [vmem:[#allocation4] sm:$0xff]  }
  0x24   :  { %385 = vmatpush3.bf16.msra.mxu0 %v438_v5  ;;  %404 = vmatprep.subr.bf16.mxu1 %v503_v2  ;;  %v346_v41 = vld [vmem:[%s602_s4] ss:$0 sm:$0xff] }
  0x25   :  { %386 = vmatprep.subr.bf16.mxu0 %v503_v2  ;;  %405 = vmatpush3.bf16.msra.mxu1 %v446_v12  ;;  %v355_v49 = vld [vmem:[%s604_s6] ss:$0 sm:$0xff] }
  0x26   :  { %406 = vmatprep.subr.bf16.mxu1 %v503_v2 }
  0x27   :  { %436 = vset.pattern.permute.xlu0 %v505_v7 }
  0x28   :  { %387 = vmatpush3.bf16.msra.mxu0 %v439_v8 }
  0x29   :  { %388 = vmatprep.subr.bf16.mxu0 %v503_v2  ;;  %407 = vmatpush3.bf16.msra.mxu1 %v447_v14 }
  0x2a   :  { %408 = vmatprep.subr.bf16.mxu1 %v503_v2 }
  0x2c   :  { %389 = vmatpush3.bf16.msra.mxu0 %v440_v9 }
  0x2d   :  { %390 = vmatprep.subr.bf16.mxu0 %v503_v2  ;;  %409 = vmatpush3.bf16.msra.mxu1 %v448_v16 }
  0x2e   :  { %410 = vmatprep.subr.bf16.mxu1 %v503_v2 }
  0x30   :  { %391 = vmatpush3.bf16.msra.mxu0 %v441_v11 }
  0x31   :  { %392 = vmatprep.subr.bf16.mxu0 %v503_v2  ;;  %411 = vmatpush3.bf16.msra.mxu1 %v449_v18 }
  0x32   :  { %412 = vmatprep.subr.bf16.mxu1 %v503_v2 }
  0x34   :  { %393 = vmatpush3.bf16.msra.mxu0 %v442_v13 }
  0x35   :  { %394 = vmatprep.subr.bf16.mxu0 %v503_v2  ;;  %413 = vmatpush3.bf16.msra.mxu1 %v450_v19 }
  0x36   :  { %414 = vmatprep.subr.bf16.mxu1 %v503_v2 }
  0x38   :  { %395 = vmatpush3.bf16.msra.mxu0 %v443_v15 }
  0x39   :  { %396 = vmatprep.subr.bf16.mxu0 %v503_v2  ;;  %415 = vmatpush3.bf16.msra.mxu1 %v451_v39 }
  0x3a   :  { %416 = vmatprep.subr.bf16.mxu1 %v503_v2 }
  0x3c   :  { %397 = vmatpush3.bf16.msra.mxu0 %v444_v17 }
  0x3d   :  { %417 = vmatpush3.bf16.msra.mxu1 %v452_v40 }
  0x99   :  { %v61_v21 = vpop.permute.xlu0 %60  ;;  %v89_v22 = vpop.permute.xlu1 %88 }
  0x9a   :  { %v67_v23 = vmul.f32 %v341_v20, %v61_v21  ;;  %v95_v32 = vmul.f32 %v344_v26, %v89_v22 }
  0x9c   :  { %v74_v30 = vadd.f32 %v342_v24, %v67_v23 }
  0x9e   :  { %v78_v27 = vpop.permute.xlu0 %77  ;;  %v100_v29 = vpop.permute.xlu1 %99 }
  0x9f   :  { %v84_v31 = vmul.f32 %v343_v25, %v78_v27  ;;  %v106_v34 = vmul.f32 %v345_v28, %v100_v29 }
  0xa1   :  { %v85_v33 = vadd.f32 %v84_v31, %v74_v30 }
  0xa3   :  { %v96_v35 = vadd.f32 %v95_v32, %v85_v33 }
  0xa5   :  { %v107_v36 = vadd.f32 %v106_v34, %v96_v35 }
  0xa7   :  { %v108_v37 = vmax.f32 %v107_v36, 0.0 }
  0xa9   :  { %v109_v38 = vpack.c.bf16 %v108_v37, %v108_v37 }
  0xab   :  { %399 = vmatmul.mubr.bf16.vlgmr.msra.gmra.mxu0 %v109_v38 }
 0x16b   :  { %v215_v42 = vpop.f32.mrf.mxu0 }
 0x16c   :  { %v216_v43 = vadd.f32 %v346_v41, %v215_v42 }
 0x16d   :  { %v400_v44 = vpop.f32.mrf.mxu0 }
 0x16e   :  { %v221_v45 = vmax.f32 %v216_v43, 0.0 }
 0x16f   :  { %v218_v46 = vpop.f32.mrf.mxu0 }
 0x170   :  { %v222_v47 = vpack.c.bf16 %v221_v45, %v221_v45 }
 0x171   :  { %v401_v48 = vpop.f32.mrf.mxu0 }
 0x172   :  { %419 = vmatmul.mubr.bf16.vlgmr.msra.gmra.mxu1 %v222_v47 }
 0x232   :  { %v328_v50 = vpop.f32.mrf.mxu1 }
 0x233   :  { %v329_v51 = vadd.f32 %v355_v49, %v328_v50 }
 0x234   :  { %v420_v52 = vpop.f32.mrf.mxu1 }
 0x235   :  { %334 = vst [vmem:[%s605_s7] sm:$0xff] %v329_v51 }
 0x236   :  { %v331_v53 = vpop.f32.mrf.mxu1 }
 0x238   :  { %v421_v54 = vpop.f32.mrf.mxu1 }
 0x239   :  { %339 = vsyncpa [#allocation3], 1 }
 0x23a   :  { %340 = vsyncpa [#allocation5], 1 }

</bundles_post_ra>
